<compile_context>
chip_gen: v6e
topology: v6e:2x2x1
jax: 0.10.0
libtpu: 0.0.40
codegen_flags: <defaults>
</compile_context>

<pallas_src>
import functools

import jax
import jax.numpy as jnp
from jax.experimental import pallas as pl
from jax.experimental.pallas import tpu as pltpu


def _round_up(n, m):
    return ((n + m - 1) // m) * m


def _check_basis_config(degree, knots):
    if degree == 0:
        raise ValueError("Degree should not be 0 (mirrors Truncated_power).")
    if degree == 1 and len(knots) > 0:
        # The original module indexes self.knots[j - degree] one past the end for
        # degree==1, i.e. it is broken for this config; fail with a clear message
        # instead of an obscure IndexError at trace time.
        raise ValueError("degree==1 with non-empty knots is unsupported (the "
                         "original Truncated_power module is broken for it).")


def _truncated_power_cols(t, degree, knots, num_basis):
    """Truncated power basis columns for t of shape (..., 1).

    Faithful to Truncated_power.forward. degree/knots are static -> unrolled at
    trace time; each column is (..., 1) f32.
    """
    cols = []
    for j in range(num_basis):
        if j <= degree:
            cols.append(jnp.ones_like(t) if j == 0 else t ** j)
        elif degree == 1:
            cols.append(jnp.maximum(t - knots[j - degree], 0.0))
        else:
            cols.append(jnp.maximum(t - knots[j - degree - 1], 0.0) ** degree)
    return cols


def _dynamic_fc_kernel(x_ref, t_ref, w_ref, o_ref, lhs_ref, *,
                       degree, knots, num_basis, activation, piece_width):
    # x: (bt, P) input dtype (ones column + zero pad already appended)
    # t: (bt, 1) f32 ; w: (K*P, bo) compute_dtype ; lhs scratch: (bt, K*P)
    x = x_ref[...].astype(jnp.float32)
    t = t_ref[...].astype(jnp.float32)

    # Basis + scaling in f32 on the VPU (v5e has no bf16 VPU), cast once per
    # piece for the MXU. Static lane-aligned slice stores -> whole-vreg vst,
    # no concatenate / cross-lane relayout.
    cols = _truncated_power_cols(t, degree, knots, num_basis)   # K x (bt, 1)
    P = piece_width
    for k in range(num_basis):
        lhs_ref[:, k * P:(k + 1) * P] = (cols[k] * x).astype(lhs_ref.dtype)

    # One fused MXU matmul (contraction depth K*P), f32 accumulation.
    acc = jnp.dot(lhs_ref[...], w_ref[...], preferred_element_type=jnp.float32)

    if activation == "relu":
        acc = jnp.maximum(acc, 0.0)
    # activation is None -> identity

    o_ref[...] = acc.astype(o_ref.dtype)


def prepare_dynamic_fc_params(weights, bias=None, *, is_bias=True,
                              compute_dtype=jnp.bfloat16):
    """One-time parameter packing (do at setup, NOT per forward call).

    weights: (IN, OUT, K), bias: (OUT, K) -> fused (K*P, OUT_pad) matrix where
    P = round_up(IN + is_bias, 128). Per-basis block k holds W[:, :, k] in rows
    k*P .. k*P+IN-1, bias[:, k] in row k*P+IN (matching the ones column appended
    to x), and zeros in the lane-alignment padding rows. OUT is zero-padded to a
    multiple of 128 (lane-dense stores); cast to the MXU compute dtype.
    """
    IN, OUT, K = weights.shape
    w_kio = jnp.transpose(weights, (2, 0, 1)).astype(jnp.float32)      # (K, IN, OUT)
    if is_bias:
        b_k1o = jnp.transpose(bias, (1, 0))[:, None, :].astype(jnp.float32)
        w_kio = jnp.concatenate([w_kio, b_k1o], axis=1)                # (K, IN+1, OUT)
    in_aug = w_kio.shape[1]
    P = _round_up(in_aug, 128)
    if P != in_aug:
        w_kio = jnp.pad(w_kio, ((0, 0), (0, P - in_aug), (0, 0)))
    w_flat = w_kio.reshape(K * P, OUT)
    out_pad = _round_up(OUT, 128)
    if out_pad != OUT:
        w_flat = jnp.pad(w_flat, ((0, 0), (0, out_pad - OUT)))
    return w_flat.astype(compute_dtype)


def _pick_out_tile(out_padded, limit):
    """Largest multiple of 128 that divides out_padded and is <= limit."""
    n = out_padded // 128
    for d in range(max(1, min(limit // 128, n)), 0, -1):
        if n % d == 0:
            return 128 * d
    return 128


def dynamic_fc(x, t, w_fused, *, out_dim, degree, knots,
               activation="relu", is_bias=True, is_last_layer=False,
               block_b=256, block_out=512, compute_dtype=jnp.bfloat16,
               out_dtype=jnp.float32, vmem_budget_bytes=24 << 20):
    """Pallas equivalent of Dynamic_FC.forward((x, t)).

    x: (B, IN) (f32 or bf16) ; t: (B,) or (B,1) in [0,1]
    w_fused: output of prepare_dynamic_fc_params -> (K*P, OUT_pad)
    """
    _check_basis_config(degree, knots)
    B, IN = x.shape
    K = degree + 1 + len(knots)
    in_aug = IN + (1 if is_bias else 0)
    P = _round_up(in_aug, 128)
    rows, out_padded = w_fused.shape
    assert rows == K * P, "w_fused was not packed by prepare_dynamic_fc_params"
    assert out_padded % 128 == 0 and out_dim <= out_padded

    # ---- tile selection -----------------------------------------------------
    sub = 16 if jnp.dtype(compute_dtype) == jnp.dtype(jnp.bfloat16) else 8
    n_bt = -(-B // block_b)                 # balanced batch tiles
    if B >= 32:
        n_bt = max(n_bt, 2)                 # >=2 tiles so v7x's 2 TCs both work
    bt = _round_up(-(-B // n_bt), sub)
    bo = _pick_out_tile(out_padded, max(128, block_out))

    x_bytes = jnp.dtype(x.dtype).itemsize
    w_bytes = jnp.dtype(w_fused.dtype).itemsize
    o_bytes = jnp.dtype(out_dtype).itemsize
    l_bytes = jnp.dtype(compute_dtype).itemsize

    def vmem_need(bt_, bo_):
        return (2 * bt_ * P * x_bytes + 2 * bt_ * 4     # x, t (double-buffered)
                + 2 * rows * bo_ * w_bytes              # weight slab (double-buffered)
                + 2 * bt_ * bo_ * o_bytes               # output (double-buffered)
                + bt_ * rows * l_bytes)                 # lhs scratch

    # Shrink the (dominant) weight tile first, then the batch tile, to stay in
    # budget — keeps pipelining headroom on v7x's 64 MiB VMEM.
    while vmem_need(bt, bo) > vmem_budget_bytes and bo > 128:
        bo = _pick_out_tile(out_padded, bo - 128)
    while vmem_need(bt, bo) > vmem_budget_bytes and bt > sub:
        bt = max(sub, _round_up(bt // 2, sub))

    b_pad = _round_up(B, bt)

    # ---- input prep (keep x's dtype: bf16 inputs halve DMA on v5e/v6e) ------
    x_p = x
    if is_bias:
        x_p = jnp.concatenate([x_p, jnp.ones((B, 1), x_p.dtype)], axis=-1)
    if P != x_p.shape[1]:
        x_p = jnp.pad(x_p, ((0, 0), (0, P - x_p.shape[1])))
    t_p = jnp.reshape(t, (B, 1)).astype(jnp.float32)
    if b_pad != B:
        x_p = jnp.pad(x_p, ((0, b_pad - B), (0, 0)))
        t_p = jnp.pad(t_p, ((0, b_pad - B), (0, 0)))

    kernel = functools.partial(
        _dynamic_fc_kernel,
        degree=degree, knots=tuple(float(kn) for kn in knots),
        num_basis=K, activation=activation, piece_width=P)

    # Grid: OUT tiles outer, batch tiles inner -> the weight block (constant
    # block index across batch tiles) is DMA'd once per OUT tile and stays
    # VMEM-resident across the inner loop.
    grid = (out_padded // bo, b_pad // bt)
    vmem_limit = min(max(int(vmem_need(bt, bo) * 1.25) + (1 << 20), 16 << 20),
                     40 << 20)

    z_pad = pl.pallas_call(
        kernel,
        out_shape=jax.ShapeDtypeStruct((b_pad, out_padded), out_dtype),
        grid=grid,
        in_specs=[
            pl.BlockSpec((bt, P), lambda j, i: (i, 0)),
            pl.BlockSpec((bt, 1), lambda j, i: (i, 0)),
            pl.BlockSpec((rows, bo), lambda j, i: (0, j)),   # resident across batch
        ],
        out_specs=pl.BlockSpec((bt, bo), lambda j, i: (i, j)),
        scratch_shapes=[pltpu.VMEM((bt, rows), compute_dtype)],   # lhs scratch
        compiler_params=pltpu.CompilerParams(
            dimension_semantics=("parallel", "parallel"),
            vmem_limit_bytes=vmem_limit),
    )(x_p, t_p, w_fused)

    # When stacking layers, prefer out_dtype=bf16 and keep the padded slab
    # flowing to the next layer; slice only at the end of the stack.
    z = z_pad[:B, :out_dim]
    if is_last_layer:
        return z
    return (z, t)


# ----------------------------- references ---------------------------------

def _reference_module(x, t, weights, bias, *, degree, knots, activation, is_bias):
    """Pure-JAX f32 mirror of the PyTorch Dynamic_FC.forward."""
    B = x.shape[0]
    K = degree + 1 + len(knots)
    t2 = jnp.reshape(t, (B, 1)).astype(jnp.float32)
    t_basis = jnp.concatenate(
        _truncated_power_cols(t2, degree, tuple(knots), K), axis=-1)      # (B, K)
    weighted_x = jnp.einsum("bi,iok->bok", x.astype(jnp.float32),
                            weights.astype(jnp.float32), precision="highest")
    z = jnp.sum(weighted_x * t_basis[:, None, :], axis=2)                 # (B, OUT)
    if is_bias:
        z = z + jnp.matmul(t_basis, bias.T.astype(jnp.float32), precision="highest")
    if activation == "relu":
        z = jnp.maximum(z, 0.0)
    return z


def _reference_fused(x, t, w_fused, *, out_dim, degree, knots, activation,
                     is_bias, compute_dtype):
    """Mirrors the kernel math (same operand rounding) for a tight comparison."""
    B, IN = x.shape
    K = degree + 1 + len(knots)
    in_aug = IN + (1 if is_bias else 0)
    P = _round_up(in_aug, 128)
    x_aug = x.astype(jnp.float32)
    if is_bias:
        x_aug = jnp.concatenate([x_aug, jnp.ones((B, 1), jnp.float32)], axis=-1)
    if P != in_aug:
        x_aug = jnp.pad(x_aug, ((0, 0), (0, P - in_aug)))
    t2 = jnp.reshape(t, (B, 1)).astype(jnp.float32)
    cols = _truncated_power_cols(t2, degree, tuple(knots), K)
    pieces = [(c * x_aug).astype(compute_dtype).astype(jnp.float32) for c in cols]
    lhs = jnp.concatenate(pieces, axis=-1)
    z = jnp.matmul(lhs, w_fused.astype(jnp.float32), precision="highest")
    if activation == "relu":
        z = jnp.maximum(z, 0.0)
    return z[:, :out_dim]


if __name__ == "__main__":
    # Small shapes consistent with the module: x (B, input_dim), t (B,)
    B, IN, OUT = 8, 32, 16
    degree, knots = 2, [1.0 / 3.0, 2.0 / 3.0]
    K = degree + 1 + len(knots)   # 5

    key = jax.random.PRNGKey(0)
    kx, kt, kw, kb = jax.random.split(key, 4)
    x = jax.random.normal(kx, (B, IN), dtype=jnp.float32)
    t = jax.random.uniform(kt, (B,), dtype=jnp.float32)               # treatment in [0, 1]
    weights = jax.random.normal(kw, (IN, OUT, K), dtype=jnp.float32)  # ~ torch.randn
    bias = 0.1 * jax.random.normal(kb, (OUT, K), dtype=jnp.float32)   # nonzero -> exercise bias path

    # --- optimized bf16-operand path (f32 accumulation on the MXU) ---
    w_bf16 = prepare_dynamic_fc_params(weights, bias, is_bias=True,
                                       compute_dtype=jnp.bfloat16)
    z_bf16, t_out = dynamic_fc(x, t, w_bf16, out_dim=OUT, degree=degree, knots=knots,
                               activation="relu", is_bias=True, is_last_layer=False,
                               compute_dtype=jnp.bfloat16)
    z_bf16 = jax.block_until_ready(z_bf16)

    ref_bf16 = _reference_fused(x, t, w_bf16, out_dim=OUT, degree=degree, knots=knots,
                                activation="relu", is_bias=True,
                                compute_dtype=jnp.bfloat16)
    assert z_bf16.shape == (B, OUT)
    assert jnp.allclose(z_bf16, ref_bf16, atol=2e-3, rtol=2e-3), "bf16 kernel mismatch"

    # --- f32 operand path, checked against the exact module semantics ---
    w_f32 = prepare_dynamic_fc_params(weights, bias, is_bias=True,
                                      compute_dtype=jnp.float32)
    z_f32, _ = dynamic_fc(x, t, w_f32, out_dim=OUT, degree=degree, knots=knots,
                          activation="relu", is_bias=True, is_last_layer=False,
                          compute_dtype=jnp.float32)
    z_f32 = jax.block_until_ready(z_f32)
    ref_f32 = _reference_module(x, t, weights, bias, degree=degree, knots=knots,
                                activation="relu", is_bias=True)
    assert jnp.allclose(z_f32, ref_f32, atol=5e-3, rtol=5e-3), "f32 kernel mismatch"

    # loose sanity: bf16 kernel vs exact f32 module semantics (bf16 rounding only)
    assert jnp.allclose(z_bf16, ref_f32, atol=0.25, rtol=0.05), "bf16 drift too large"

    print("KERNEL_OK")
</pallas_src>

<mosaic_0001>
module attributes {stable_mosaic.version = 11 : i64} {
  func.func @_dynamic_fc_kernel(%arg0: i32, %arg1: i32, %arg2: memref<16x128xf32, #tpu.memory_space<vmem>>, %arg3: memref<16x1xf32, #tpu.memory_space<vmem>>, %arg4: memref<640x128xbf16, #tpu.memory_space<vmem>>, %arg5: memref<16x128xf32, #tpu.memory_space<vmem>>, %arg6: memref<16x640xbf16, #tpu.memory_space<vmem>>) attributes {dimension_semantics = [#tpu.dimension_semantics<parallel>, #tpu.dimension_semantics<parallel>], iteration_bounds = array<i64: 1, 1>, scalar_prefetch = 0 : i64, scratch_operands = 1 : i64, tpu.core_type = #tpu.core_type<tc>, window_params = [{transform_indices = @transform_0, window_bounds = array<i64: 16, 128>}, {transform_indices = @transform_1, window_bounds = array<i64: 16, 1>}, {transform_indices = @transform_2, window_bounds = array<i64: 640, 128>}, {transform_indices = @transform_3, window_bounds = array<i64: 16, 128>}]} {
    %c0 = arith.constant 0 : index
    %c0_0 = arith.constant 0 : index
    %0 = vector.load %arg2[%c0, %c0_0] : memref<16x128xf32, #tpu.memory_space<vmem>>, vector<16x128xf32>
    %c0_1 = arith.constant 0 : index
    %c0_2 = arith.constant 0 : index
    %1 = vector.load %arg3[%c0_1, %c0_2] : memref<16x1xf32, #tpu.memory_space<vmem>>, vector<16x1xf32>
    %cst = arith.constant 1.000000e+00 : f32
    %2 = vector.broadcast %cst : f32 to vector<16x1xf32>
    %3 = arith.mulf %1, %1 : vector<16x1xf32>
    %cst_3 = arith.constant 0.333333343 : f32
    %4 = vector.broadcast %cst_3 : f32 to vector<16x1xf32>
    %5 = arith.subf %1, %4 : vector<16x1xf32>
    %cst_4 = arith.constant 0.000000e+00 : f32
    %6 = vector.broadcast %cst_4 : f32 to vector<16x1xf32>
    %7 = arith.maximumf %5, %6 : vector<16x1xf32>
    %8 = arith.mulf %7, %7 : vector<16x1xf32>
    %cst_5 = arith.constant 0.666666686 : f32
    %9 = vector.broadcast %cst_5 : f32 to vector<16x1xf32>
    %10 = arith.subf %1, %9 : vector<16x1xf32>
    %cst_6 = arith.constant 0.000000e+00 : f32
    %11 = vector.broadcast %cst_6 : f32 to vector<16x1xf32>
    %12 = arith.maximumf %10, %11 : vector<16x1xf32>
    %13 = arith.mulf %12, %12 : vector<16x1xf32>
    %14 = vector.broadcast %2 : vector<16x1xf32> to vector<16x128xf32>
    %15 = arith.mulf %14, %0 : vector<16x128xf32>
    %16 = arith.truncf %15 : vector<16x128xf32> to vector<16x128xbf16>
    %c0_7 = arith.constant 0 : index
    %c0_8 = arith.constant 0 : index
    %17 = vector.load %arg6[%c0_7, %c0_8] : memref<16x640xbf16, #tpu.memory_space<vmem>>, vector<16x128xbf16>
    tpu.vector_store %arg6[%c0_7, %c0_8], %16 {strides = array<i32>} : memref<16x640xbf16, #tpu.memory_space<vmem>>, vector<16x128xbf16>,
    %18 = vector.broadcast %1 : vector<16x1xf32> to vector<16x128xf32>
    %19 = arith.mulf %18, %0 : vector<16x128xf32>
    %20 = arith.truncf %19 : vector<16x128xf32> to vector<16x128xbf16>
    %c0_9 = arith.constant 0 : index
    %c128 = arith.constant 128 : index
    %21 = vector.load %arg6[%c0_9, %c128] : memref<16x640xbf16, #tpu.memory_space<vmem>>, vector<16x128xbf16>
    tpu.vector_store %arg6[%c0_9, %c128], %20 {strides = array<i32>} : memref<16x640xbf16, #tpu.memory_space<vmem>>, vector<16x128xbf16>,
    %22 = vector.broadcast %3 : vector<16x1xf32> to vector<16x128xf32>
    %23 = arith.mulf %22, %0 : vector<16x128xf32>
    %24 = arith.truncf %23 : vector<16x128xf32> to vector<16x128xbf16>
    %c0_10 = arith.constant 0 : index
    %c256 = arith.constant 256 : index
    %25 = vector.load %arg6[%c0_10, %c256] : memref<16x640xbf16, #tpu.memory_space<vmem>>, vector<16x128xbf16>
    tpu.vector_store %arg6[%c0_10, %c256], %24 {strides = array<i32>} : memref<16x640xbf16, #tpu.memory_space<vmem>>, vector<16x128xbf16>,
    %26 = vector.broadcast %8 : vector<16x1xf32> to vector<16x128xf32>
    %27 = arith.mulf %26, %0 : vector<16x128xf32>
    %28 = arith.truncf %27 : vector<16x128xf32> to vector<16x128xbf16>
    %c0_11 = arith.constant 0 : index
    %c384 = arith.constant 384 : index
    %29 = vector.load %arg6[%c0_11, %c384] : memref<16x640xbf16, #tpu.memory_space<vmem>>, vector<16x128xbf16>
    tpu.vector_store %arg6[%c0_11, %c384], %28 {strides = array<i32>} : memref<16x640xbf16, #tpu.memory_space<vmem>>, vector<16x128xbf16>,
    %30 = vector.broadcast %13 : vector<16x1xf32> to vector<16x128xf32>
    %31 = arith.mulf %30, %0 : vector<16x128xf32>
    %32 = arith.truncf %31 : vector<16x128xf32> to vector<16x128xbf16>
    %c0_12 = arith.constant 0 : index
    %c512 = arith.constant 512 : index
    %33 = vector.load %arg6[%c0_12, %c512] : memref<16x640xbf16, #tpu.memory_space<vmem>>, vector<16x128xbf16>
    tpu.vector_store %arg6[%c0_12, %c512], %32 {strides = array<i32>} : memref<16x640xbf16, #tpu.memory_space<vmem>>, vector<16x128xbf16>,
    %c0_13 = arith.constant 0 : index
    %c0_14 = arith.constant 0 : index
    %34 = vector.load %arg6[%c0_13, %c0_14] : memref<16x640xbf16, #tpu.memory_space<vmem>>, vector<16x640xbf16>
    %c0_15 = arith.constant 0 : index
    %c0_16 = arith.constant 0 : index
    %35 = vector.load %arg4[%c0_15, %c0_16] : memref<640x128xbf16, #tpu.memory_space<vmem>>, vector<640x128xbf16>
    %cst_17 = arith.constant dense<0.000000e+00> : vector<16x128xf32>
    %36 = tpu.matmul %34, %35, %cst_17 {dimension_numbers = #tpu.dot_dimension_numbers<[1], [0], [0], [1], [0, 0, 1, 1], [], []>} : vector<16x640xbf16>, vector<640x128xbf16>, vector<16x128xf32> -> vector<16x128xf32>
    %cst_18 = arith.constant 0.000000e+00 : f32
    %37 = vector.broadcast %cst_18 : f32 to vector<16x128xf32>
    %38 = arith.maximumf %36, %37 : vector<16x128xf32>
    %c0_19 = arith.constant 0 : index
    %c0_20 = arith.constant 0 : index
    %39 = vector.load %arg5[%c0_19, %c0_20] : memref<16x128xf32, #tpu.memory_space<vmem>>, vector<16x128xf32>
    tpu.vector_store %arg5[%c0_19, %c0_20], %38 {strides = array<i32>} : memref<16x128xf32, #tpu.memory_space<vmem>>, vector<16x128xf32>,
    return
  }
  func.func @transform_0(%arg0: i32, %arg1: i32) -> (i32, i32) {
    %c0_i32 = arith.constant 0 : i32
    %c0_i32_0 = arith.constant 0 : i32
    return %arg1, %c0_i32 : i32, i32
  }
  func.func @transform_1(%arg0: i32, %arg1: i32) -> (i32, i32) {
    %c0_i32 = arith.constant 0 : i32
    %c0_i32_0 = arith.constant 0 : i32
    return %arg1, %c0_i32 : i32, i32
  }
  func.func @transform_2(%arg0: i32, %arg1: i32) -> (i32, i32) {
    %c0_i32 = arith.constant 0 : i32
    %c0_i32_0 = arith.constant 0 : i32
    return %c0_i32, %arg0 : i32, i32
  }
  func.func @transform_3(%arg0: i32, %arg1: i32) -> (i32, i32) {
    %c0_i32 = arith.constant 0 : i32
    return %arg1, %arg0 : i32, i32
  }
}

</mosaic_0001>

<bundles_post_ra>
// kernel: tpu_custom_call.1
= control target key start
LH: loop header
LB: loop body
LE: loop exit
PB: predicated region body
PF: predicated region fallthrough
CT: control target
= control target key end

     0   :  { %8 = vsyncpa [#allocation4], 0  ;;  %s958_s0 = inlined_call_operand.vmem [shape: f32[16,128], index: 0, kind: input, shape index: {}]   ;;  %s959_s1 = inlined_call_operand.vmem [shape: f32[16,1], index: 1, kind: input, shape index: {}]   ;;  %s960_s2 = inlined_call_operand.hbm [shape: bf16[640,128], index: 2, kind: input, shape index: {}]   ;;  %s961_s3 = inlined_call_operand.hbm [shape: f32[16,128], index: 3, kind: output, shape index: {}]  }
   0x1   :  { %9 = vsyncpa [#allocation5], 0  ;;  %s886_s12 = smov [#allocation3]  }
   0x2   :  { %s19_s13 = sshll.u32 %s886_s12, 4  ;;  %s20_s13 = int_to_ptr.vmem [resolvable:$true] %s19_s13 }
   0x3   :  { %s850_s14 = scalar_lea.vmem %s20_s13, 5120  ;;  %p855_p1 = scmp.lt.s32.totalorder %s20_s13, %s20_s13 }
   0x4   :  { %p851_p0 = scmp.ne.s32.totalorder %s20_s13, %s850_s14  ;;  %p856_p2 = scmp.lt.s32.totalorder %s850_s14, %s850_s14 }
   0x6   :  { %p857_p3 = por %p856_p2, %p855_p1 }
   0x8   :  { %p858_p4 = pnand %p857_p3, %p851_p0 }
   0xa   :  { %861 = shalt.err (!%p858_p4)
}
   0xb   :  { %s887_s15 = smov 64   ;;  %s888_s16 = smov 4  }
   0xc   :  { %25 = dma.hbm_to_vmem [thread:$0]  %s960_s2, 5120, %s20_s13, [#allocation4], %s887_s15, %s887_s15, %s888_s16  }
   0xd   :  { %882 = dma.done.wait [#allocation4], 5120  }
   0xe   :  { %883 = vsyncadd [#allocation4], 4294962176  ;;  %v889_v0 = vmov 0   ;;  %v32_v1 = vld [vmem:[%s959_s1] sm:$0xff]  ;;  %v33_v2 = vld [vmem:[%s959_s1 + $0x8] sm:$0xff]  ;;  %v890_v51 = vmov 0.0  }
   0xf   :  { %793 = vset.pattern.permute.xlu0 %v889_v0  ;;  %794 = vset.pattern.permute.xlu1 %v889_v0  ;;  %v34_v3 = vmul.f32 %v32_v1, %v32_v1  ;;  %v642_v4 = vadd.f32 -0.33333334, %v32_v1  ;;  %v643_v5 = vadd.f32 -0.33333334, %v33_v2  ;;  %v644_v6 = vadd.f32 -0.6666667, %v32_v1 }
  0x10   :  { %60 = vperm.xlu0 %793, %v32_v1   ;;  %v645_v7 = vadd.f32 -0.6666667, %v33_v2  ;;  %v795_v8 = vld [vmem:[#allocation3 + $0x78] sm:$0xff]   ;;  %v35_v10 = vmul.f32 %v33_v2, %v33_v2  ;;  %v797_v15 = vld [vmem:[#allocation3 + $0x70] sm:$0xff]   ;;  %v800_v20 = vld [vmem:[#allocation3 + $0x68] sm:$0xff]   ;;  %vm891_vm0 = vmmov 0  }
  0x11   :  { %v796_v9 = vld [vmem:[#allocation3 + $0x38] sm:$0xff]   ;;  %82 = vperm.xlu1 %794, %v34_v3   ;;  %v38_v11 = vmax.f32 %v642_v4, 0.0  ;;  %v39_v12 = vmax.f32 %v643_v5, 0.0  ;;  %711 = vmatprep.subr.bf16.mxu0 %v795_v8  ;;  %v44_v14 = vmax.f32 %v644_v6, 0.0  ;;  %v798_v16 = vld [vmem:[#allocation3 + $0x30] sm:$0xff]   ;;  %v802_v23 = vld [vmem:[#allocation3 + $0x28] sm:$0xff]  }
  0x12   :  { %712 = vmatpush3.bf16.msra.mxu0 %v796_v9  ;;  %v45_v18 = vmax.f32 %v645_v7, 0.0  ;;  %v799_v19 = vld [vmem:[#allocation3 + $0xf8] sm:$0xff]   ;;  %v803_v25 = vld [vmem:[#allocation3 + $0xf0] sm:$0xff]   ;;  %v804_v26 = vld [vmem:[#allocation3 + $0x60] sm:$0xff]  }
  0x13   :  { %v40_v13 = vmul.f32 %v38_v11, %v38_v11  ;;  %v41_v17 = vmul.f32 %v39_v12, %v39_v12  ;;  %713 = vmatprep.subr.bf16.mxu0 %v797_v15  ;;  %v46_v21 = vmul.f32 %v44_v14, %v44_v14  ;;  %v801_v22 = vld [vmem:[#allocation3 + $0xb8] sm:$0xff]   ;;  %733 = vmatprep.subr.bf16.mxu1 %v799_v19  ;;  %v805_v27 = vld [vmem:[#allocation3 + $0xb0] sm:$0xff]   ;;  %v806_v28 = vld [vmem:[#allocation3 + $0x20] sm:$0xff]  }
  0x14   :  { %65 = vperm.xlu0 %793, %v33_v2   ;;  %v47_v24 = vmul.f32 %v45_v18, %v45_v18  ;;  %734 = vmatpush3.bf16.msra.mxu1 %v801_v22  ;;  %v927_v29 = vld [vmem:[%s958_s0] sm:$0xff]  ;;  %v807_v31 = vld [vmem:[#allocation3 + $0xe8] sm:$0xff]   ;;  %v934_v35 = vld [vmem:[%s958_s0 + $0x8] sm:$0xff]  ;;  %s892_s0 = smov [#allocation6]  }
  0x15   :  { %87 = vperm.xlu1 %794, %v35_v10   ;;  %735 = vmatprep.subr.bf16.mxu1 %v803_v25  ;;  %v701_v30 = vpack.c.bf16 %v927_v29, %v927_v29  ;;  %v808_v32 = vld [vmem:[#allocation3 + $0x58] sm:$0xff]   ;;  %v809_v33 = vld [vmem:[#allocation3 + $0xa8] sm:$0xff]   ;;  %v702_v36 = vpack.c.bf16 %v934_v35, %v934_v35  ;;  %v811_v37 = vld [vmem:[#allocation3 + $0xe0] sm:$0xff]   ;;  %s630_s25 = sshll.u32 %s892_s0, 4  ;;  %s631_s25 = int_to_ptr.vmem [resolvable:$true] %s630_s25 }
  0x16   :  { %714 = vmatpush3.bf16.msra.mxu0 %v798_v16  ;;  %v810_v34 = vld [vmem:[#allocation3 + $0x18] sm:$0xff]   ;;  %v812_v38 = vld [vmem:[#allocation3 + $0x50] sm:$0xff]   ;;  %v813_v39 = vld [vmem:[#allocation3 + $0xa0] sm:$0xff]   ;;  %s862_s26 = scalar_lea.vmem %s631_s25, 256  ;;  %p867_p6 = scmp.lt.s32.totalorder %s631_s25, %s631_s25 }
  0x17   :  { %715 = vmatprep.subr.bf16.mxu0 %v800_v20  ;;  %56 = vst [vmem:[#allocation2] sm:$0xf] %v701_v30  ;;  %57 = vst [vmem:[#allocation2 + $0x14] sm:$0xf] %v702_v36  ;;  %v814_v40 = vld [vmem:[#allocation3 + $0x10] sm:$0xff]   ;;  %v815_v41 = vld [vmem:[#allocation3 + $0xd8] sm:$0xff]   ;;  %p863_p5 = scmp.ne.s32.totalorder %s631_s25, %s862_s26  ;;  %p868_p7 = scmp.lt.s32.totalorder %s862_s26, %s862_s26 }
  0x18   :  { %104 = vperm.xlu0 %793, %v40_v13   ;;  %736 = vmatpush3.bf16.msra.mxu1 %v805_v27  ;;  %v816_v42 = vld [vmem:[#allocation3 + $0x48] sm:$0xff]   ;;  %v817_v43 = vld [vmem:[#allocation3 + $0x98] sm:$0xff]   ;;  %v819_v45 = vld [vmem:[#allocation3 + $0xd0] sm:$0xff]  }
  0x19   :  { %109 = vperm.xlu1 %794, %v41_v17   ;;  %737 = vmatprep.subr.bf16.mxu1 %v807_v31  ;;  %v818_v44 = vld [vmem:[#allocation3 + $0x8] sm:$0xff]   ;;  %v820_v46 = vld [vmem:[#allocation3 + $0x40] sm:$0xff]   ;;  %v821_v47 = vld [vmem:[#allocation3 + $0x90] sm:$0xff]   ;;  %p869_p8 = por %p868_p7, %p867_p6 }
  0x1a   :  { %716 = vmatpush3.bf16.msra.mxu0 %v802_v23  ;;  %v822_v48 = vld [vmem:[#allocation3] sm:$0xff]   ;;  %v823_v49 = vld [vmem:[#allocation3 + $0xc8] sm:$0xff]   ;;  %v828_v13 = vld [vmem:[#allocation3 + $0x138] sm:$0xff]  }
  0x1b   :  { %717 = vmatprep.subr.bf16.mxu0 %v804_v26  ;;  %v827_v50 = vld [vmem:[#allocation3 + $0x88] sm:$0xff]   ;;  %v829_v52 = vld [vmem:[#allocation3 + $0xc0] sm:$0xff]   ;;  %v831_v17 = vld [vmem:[#allocation3 + $0x130] sm:$0xff]   ;;  %p870_p9 = pnand %p869_p8, %p863_p5 }
  0x1c   :  { %126 = vperm.xlu0 %793, %v46_v21   ;;  %738 = vmatpush3.bf16.msra.mxu1 %v809_v33  ;;  %v830_v53 = vld [vmem:[#allocation3 + $0x80] sm:$0xff]   ;;  %v835_v20 = vld [vmem:[#allocation3 + $0x128] sm:$0xff]   ;;  %v837_v22 = vld [vmem:[#allocation3 + $0x118] sm:$0xff]  }
  0x1d   :  { %131 = vperm.xlu1 %794, %v47_v24   ;;  %739 = vmatprep.subr.bf16.mxu1 %v811_v37  ;;  %v836_v21 = vld [vmem:[#allocation3 + $0x120] sm:$0xff]   ;;  %v838_v23 = vld [vmem:[#allocation3 + $0x110] sm:$0xff]   ;;  %v839_v24 = vld [vmem:[#allocation3 + $0x108] sm:$0xff]  }
  0x1e   :  { %718 = vmatpush3.bf16.msra.mxu0 %v806_v28  ;;  %v824_v14 = vld [vmem:[#allocation2] ss:$20 sps:$4 sm:$0xff]   ;;  %v840_v25 = vld [vmem:[#allocation3 + $0x100] sm:$0xff]  }
  0x1f   :  { %719 = vmatprep.subr.bf16.mxu0 %v808_v32 }
  0x20   :  { %740 = vmatpush3.bf16.msra.mxu1 %v813_v39 }
  0x21   :  { %741 = vmatprep.subr.bf16.mxu1 %v815_v41 }
  0x22   :  { %720 = vmatpush3.bf16.msra.mxu0 %v810_v34 }
  0x23   :  { %721 = vmatprep.subr.bf16.mxu0 %v812_v38 }
  0x24   :  { %742 = vmatpush3.bf16.msra.mxu1 %v817_v43 }
  0x25   :  { %743 = vmatprep.subr.bf16.mxu1 %v819_v45 }
  0x26   :  { %722 = vmatpush3.bf16.msra.mxu0 %v814_v40 }
  0x27   :  { %723 = vmatprep.subr.bf16.mxu0 %v816_v42 }
  0x28   :  { %744 = vmatpush3.bf16.msra.mxu1 %v821_v47 }
  0x29   :  { %745 = vmatprep.subr.bf16.mxu1 %v823_v49 }
  0x2a   :  { %724 = vmatpush3.bf16.msra.mxu0 %v818_v44 }
  0x2b   :  { %725 = vmatprep.subr.bf16.mxu0 %v820_v46 }
  0x2c   :  { %746 = vmatpush3.bf16.msra.mxu1 %v827_v50 }
  0x2d   :  { %747 = vmatprep.subr.bf16.mxu1 %v829_v52 }
  0x2e   :  { %726 = vmatpush3.bf16.msra.mxu0 %v822_v48 }
  0x2f   :  { %764 = vmatprep.subr.bf16.mxu0 %v890_v51 }
  0x30   :  { %748 = vmatpush3.bf16.msra.mxu1 %v830_v53 }
  0x8b   :  { %v61_v54 = vpop.permute.xlu0 %60 }
  0x8c   :  { %v68_v55 = vmul.f32 %v61_v54, %v927_v29  ;;  %v83_v56 = vpop.permute.xlu1 %82 }
  0x8d   :  { %v90_v58 = vmul.f32 %v83_v56, %v927_v29 }
  0x8e   :  { %v703_v57 = vpack.c.bf16 %v68_v55, %v68_v55 }
  0x8f   :  { %v66_v59 = vpop.permute.xlu0 %65  ;;  %v705_v60 = vpack.c.bf16 %v90_v58, %v90_v58 }
  0x90   :  { %78 = vst [vmem:[#allocation2 + $0x4] sm:$0xf] %v703_v57  ;;  %v69_v61 = vmul.f32 %v66_v59, %v934_v35  ;;  %v88_v62 = vpop.permute.xlu1 %87 }
  0x91   :  { %100 = vst [vmem:[#allocation2 + $0x8] sm:$0xf] %v705_v60  ;;  %v91_v0 = vmul.f32 %v88_v62, %v934_v35 }
  0x92   :  { %v704_v63 = vpack.c.bf16 %v69_v61, %v69_v61 }
  0x93   :  { %v105_v1 = vpop.permute.xlu0 %104  ;;  %v706_v2 = vpack.c.bf16 %v91_v0, %v91_v0 }
  0x94   :  { %79 = vst [vmem:[#allocation2 + $0x18] sm:$0xf] %v704_v63  ;;  %v112_v3 = vmul.f32 %v105_v1, %v927_v29  ;;  %v110_v4 = vpop.permute.xlu1 %109 }
  0x95   :  { %101 = vst [vmem:[#allocation2 + $0x1c] sm:$0xf] %v706_v2  ;;  %v113_v6 = vmul.f32 %v110_v4, %v934_v35 }
  0x96   :  { %v707_v5 = vpack.c.bf16 %v112_v3, %v112_v3 }
  0x97   :  { %v127_v7 = vpop.permute.xlu0 %126  ;;  %v708_v8 = vpack.c.bf16 %v113_v6, %v113_v6 }
  0x98   :  { %122 = vst [vmem:[#allocation2 + $0xc] sm:$0xf] %v707_v5  ;;  %v134_v9 = vmul.f32 %v127_v7, %v927_v29  ;;  %v132_v10 = vpop.permute.xlu1 %131 }
  0x99   :  { %123 = vst [vmem:[#allocation2 + $0x20] sm:$0xf] %v708_v8  ;;  %v135_v12 = vmul.f32 %v132_v10, %v934_v35 }
  0x9a   :  { %v709_v11 = vpack.c.bf16 %v134_v9, %v134_v9 }
  0x9b   :  { %v826_v15 = vld [vmem:[#allocation2 + $0x4] ss:$20 sps:$4 sm:$0xff]   ;;  %v710_v16 = vpack.c.bf16 %v135_v12, %v135_v12 }
  0x9c   :  { %144 = vst [vmem:[#allocation2 + $0x10] sm:$0xf] %v709_v11  ;;  %530 = vmatprep.mubr.bf16.mxu0 %v826_v15  ;;  %v832_v18 = vld [vmem:[#allocation2 + $0x8] ss:$20 sps:$4 sm:$0xff]  }
  0x9d   :  { %145 = vst [vmem:[#allocation2 + $0x24] sm:$0xf] %v710_v16  ;;  %531 = vmatmul.mubr.bf16.vlgmr.msra.gmra.mxu0 %v824_v14 }
  0x9e   :  { %765 = vmatpush3.bf16.msra.mxu0 %v828_v13  ;;  %780 = vmatprep.mubr.msk.bf16.mxu0 %vm891_vm0, %v890_v51 }
  0x9f   :  { %766 = vmatprep.subr.bf16.mxu0 %v890_v51 }
  0xa0   :  { %v834_v19 = vld [vmem:[#allocation2 + $0xc] ss:$20 sps:$4 sm:$0xff]  }
  0xa1   :  { %571 = vmatprep.mubr.bf16.mxu1 %v834_v19 }
  0xa2   :  { %767 = vmatpush3.bf16.msra.mxu0 %v831_v17  ;;  %572 = vmatmul.mubr.bf16.vlgmr.msra.gmra.mxu1 %v832_v18 }
  0xa3   :  { %768 = vmatprep.subr.bf16.mxu0 %v890_v51 }
  0xa4   :  { %v841_v26 = vld [vmem:[#allocation2 + $0x10] ss:$20 sps:$4 sm:$0xff]  }
  0xa6   :  { %769 = vmatpush3.bf16.msra.mxu0 %v835_v20 }
  0xa7   :  { %770 = vmatprep.subr.bf16.mxu0 %v890_v51 }
  0xaa   :  { %771 = vmatpush3.bf16.msra.mxu0 %v836_v21 }
  0xab   :  { %772 = vmatprep.subr.bf16.mxu0 %v890_v51 }
  0xae   :  { %773 = vmatpush3.bf16.msra.mxu0 %v837_v22 }
  0xaf   :  { %774 = vmatprep.subr.bf16.mxu0 %v890_v51 }
  0xb2   :  { %775 = vmatpush3.bf16.msra.mxu0 %v838_v23 }
  0xb3   :  { %776 = vmatprep.subr.bf16.mxu0 %v890_v51 }
  0xb6   :  { %777 = vmatpush3.bf16.msra.mxu0 %v839_v24 }
  0xb7   :  { %778 = vmatprep.subr.bf16.mxu0 %v890_v51 }
  0xba   :  { %779 = vmatpush3.bf16.msra.mxu0 %v840_v25 }
  0xbd   :  { %781 = vmatmul.mubr.bf16.vlgmr.msra.gmra.mxu0 %v841_v26 }
 0x15d   :  { %v727_v28 = vpop.f32.mrf.mxu0 }
 0x15f   :  { %v728_v30 = vpop.f32.mrf.mxu0 }
 0x160   :  { %v729_v35 = vadd.f32 %v728_v30, %v727_v28 }
 0x161   :  { %v730_v32 = vpop.f32.mrf.mxu0 }
 0x162   :  { %v749_v27 = vpop.f32.mrf.mxu1 }
 0x163   :  { %v731_v36 = vpop.f32.mrf.mxu0 }
 0x164   :  { %v750_v29 = vpop.f32.mrf.mxu1  ;;  %v732_v40 = vadd.f32 %v731_v36, %v730_v32 }
 0x165   :  { %v751_v33 = vadd.f32 %v750_v29, %v749_v27 }
 0x166   :  { %v752_v31 = vpop.f32.mrf.mxu1 }
 0x167   :  { %v574_v38 = vadd.f32 %v751_v33, %v729_v35 }
 0x168   :  { %v753_v34 = vpop.f32.mrf.mxu1 }
 0x169   :  { %v754_v37 = vadd.f32 %v753_v34, %v752_v31 }
 0x16b   :  { %v577_v44 = vadd.f32 %v754_v37, %v732_v40 }
 0x17d   :  { %v614_v39 = vpop.f32.mrf.mxu0 }
 0x17e   :  { %v615_v41 = vadd.f32 %v614_v39, %v574_v38 }
 0x17f   :  { %v782_v42 = vpop.f32.mrf.mxu0 }
 0x180   :  { %v621_v43 = vmax.f32 %v615_v41, 0.0 }
 0x181   :  { %v617_v45 = vpop.f32.mrf.mxu0 }
 0x182   :  { %623 = vst [vmem:[#allocation6] sm:$0xff] %v621_v43  ;;  %v618_v46 = vadd.f32 %v617_v45, %v577_v44 }
 0x183   :  { %v783_v47 = vpop.f32.mrf.mxu0 }
 0x184   :  { %v622_v48 = vmax.f32 %v618_v46, 0.0 }
 0x186   :  { %624 = vst [vmem:[#allocation6 + $0x8] sm:$0xff] %v622_v48 }
 0x187   :  { %873 = shalt.err (!%p870_p9)
}
 0x188   :  { %s893_s27 = smov 128   ;;  %s894_s28 = smov 8  }
 0x189   :  { %636 = dma.vmem_to_hbm [thread:$0]  %s631_s25, 256, %s961_s3, [#allocation5], %s893_s27, %s893_s27, %s894_s28  }
 0x18a   :  { %884 = dma.done.wait [#allocation5], 256  }
 0x18b   :  { %885 = vsyncadd [#allocation5], 4294967040 }
 0x18c   :  { %640 = vsyncpa [#allocation4], 1 }
 0x18d   :  { %641 = vsyncpa [#allocation5], 1 }

</bundles_post_ra>
